<compile_context>
chip_gen: v7x
topology: tpu7x:2x2x1
jax: 0.10.0
libtpu: 0.0.40
codegen_flags: <defaults>
</compile_context>

<pallas_src>
import jax
import jax.numpy as jnp
from jax import lax
from jax.experimental import pallas as pl
from jax.experimental.pallas import tpu as pltpu

_NEG_SLOPE = 0.01                         # F.leaky_relu default
_LAYER_DIMS = [(4, 20), (20, 40), (40, 50), (50, 30), (30, 12), (12, 2)]
_IN_DIM = 4
_OUT_DIM = 2
_OUT_PAD = 8                              # 2 padded to 8 (sublane multiple)
_MAX_B_TILE = 4096                        # lanes per grid step (VMEM use stays < 1 MiB)
_LANE_CHUNK = 512                         # in-kernel lane chunk -> intermediates <= ~28 vregs
_NT_DIMS = (((1,), (1,)), ((), ()))       # contract last dim of both operands (A @ B.T)

_NATURAL_OK = None                        # cached result of the input-layout probe


def _round_up(n, m):
    return ((n + m - 1) // m) * m


def _leaky_relu(x):
    # identical numerics to where(x>0, x, 0.01x) since slope < 1; cheaper on the VPU
    return jnp.maximum(x, _NEG_SLOPE * x)


def init_params(key):
    """PyTorch-style params: W is (out_features, in_features), b is (out_features,)."""
    params = []
    for (fan_in, fan_out) in _LAYER_DIMS:
        key, kw, kb = jax.random.split(key, 3)
        bound = 1.0 / jnp.sqrt(jnp.float32(fan_in))
        w = jax.random.uniform(kw, (fan_out, fan_in), jnp.float32, -bound, bound)
        b = jax.random.uniform(kb, (fan_out,), jnp.float32, -bound, bound)
        params.append((w, b))
    return params


def _preprocess_params(params, first_in_pad):
    """Fold fc1 into fc2, pad dims to multiples of 8, cast fc3..fc6 weights to bf16.

    Returns [w12, b12, w3, b3, w4, b4, w5, b5, w6, b6]; weights are (out_pad, in_pad),
    biases are (out_pad, 1) f32.  The fold is exact: the reference forward applies no
    activation after fc1, so fc2(fc1(x)) == (W2@W1) x + (W2@b1 + b2).
    """
    (w1, b1), (w2, b2) = params[0], params[1]
    w12 = w2 @ w1                  # (40, 4)
    b12 = w2 @ b1 + b2             # (40,)

    layers = [(w12, b12)] + [tuple(p) for p in params[2:]]
    flat = []
    for idx, (w, b) in enumerate(layers):
        fo, fi = w.shape
        fo_p = _round_up(fo, 8)
        fi_p = first_in_pad if idx == 0 else _round_up(fi, 8)
        # First (folded) layer stays f32: its contraction depth is only 4, so the f32
        # multi-pass penalty is negligible and it keeps the input relayout robust.
        wdt = jnp.float32 if idx == 0 else jnp.bfloat16
        w_p = jnp.zeros((fo_p, fi_p), jnp.float32).at[:fo, :fi].set(w).astype(wdt)
        b_p = jnp.zeros((fo_p, 1), jnp.float32).at[:fo, 0].set(b)
        flat.extend([w_p, b_p])
    return flat


def _pick_batch_tile(batch):
    b128 = _round_up(max(batch, 1), 128)
    if b128 >= 256:
        # At least 2 batch tiles so the "parallel" grid axis shards across both
        # TensorCores on v7x; capped so per-step work stays large (amortizes ~0.35us/step).
        tile = min(_MAX_B_TILE, _round_up(b128 // 2, 128))
    else:
        tile = b128
    if tile >= _LANE_CHUNK:
        tile = (tile // _LANE_CHUNK) * _LANE_CHUNK  # make in-kernel chunking divide evenly
    return tile


def _make_kernel(b_tile, natural_input):
    chunk = _LANE_CHUNK if b_tile % _LANE_CHUNK == 0 else b_tile
    n_chunks = b_tile // chunk

    def kernel(x_ref, w12_ref, b12_ref, w3_ref, b3_ref, w4_ref, b4_ref,
               w5_ref, b5_ref, w6_ref, b6_ref, o_ref):
        # Static unroll over lane chunks: intermediates per chunk are <= (56, 512) f32
        # = 28 vregs, so the whole layer chain stays in registers (no VMEM spill).
        for c in range(n_chunks):
            off = c * chunk
            if natural_input:
                # x_ref: (b_tile, 4) batch-major.  Relayout to feature-major rides the
                # MXU pass itself: (40, chunk) = w12 (40,4) . xc(chunk,4)^T  (f32).
                xc = x_ref[pl.ds(off, chunk), :]
                h = lax.dot_general(w12_ref[...], xc, _NT_DIMS,
                                    preferred_element_type=jnp.float32)
            else:
                # x_ref: (8, b_tile) feature-major (wrapper already relaid out).
                xc = x_ref[:, pl.ds(off, chunk)]
                h = jnp.dot(w12_ref[...], xc, preferred_element_type=jnp.float32)
            h = _leaky_relu(h + b12_ref[...])
            h = _leaky_relu(jnp.dot(w3_ref[...], h.astype(jnp.bfloat16),
                                    preferred_element_type=jnp.float32) + b3_ref[...])
            h = _leaky_relu(jnp.dot(w4_ref[...], h.astype(jnp.bfloat16),
                                    preferred_element_type=jnp.float32) + b4_ref[...])
            h = _leaky_relu(jnp.dot(w5_ref[...], h.astype(jnp.bfloat16),
                                    preferred_element_type=jnp.float32) + b5_ref[...])
            h = jnp.dot(w6_ref[...], h.astype(jnp.bfloat16),
                        preferred_element_type=jnp.float32) + b6_ref[...]
            o_ref[:, pl.ds(off, chunk)] = h.astype(o_ref.dtype)

    return kernel


def _run_pallas(x, params, natural_input):
    batch, in_dim = x.shape
    b_tile = _pick_batch_tile(batch)
    b_pad = _round_up(batch, b_tile)
    grid = (b_pad // b_tile,)

    if natural_input:
        flat = _preprocess_params(params, first_in_pad=in_dim)
        if b_pad == batch:
            x_in = x
        else:
            x_in = jnp.pad(x, ((0, b_pad - batch), (0, 0)))
        x_spec = pl.BlockSpec((b_tile, in_dim), lambda i: (i, 0))
    else:
        flat = _preprocess_params(params, first_in_pad=8)
        x_in = jnp.zeros((8, b_pad), jnp.float32).at[:in_dim, :batch].set(x.T)
        x_spec = pl.BlockSpec((8, b_tile), lambda i: (0, i))

    # Params stay VMEM-resident across batch tiles (constant block index -> no re-DMA).
    param_specs = [pl.BlockSpec(p.shape, lambda i: (0, 0)) for p in flat]
    o_spec = pl.BlockSpec((_OUT_PAD, b_tile), lambda i: (0, i))

    out_t = pl.pallas_call(
        _make_kernel(b_tile, natural_input),
        out_shape=jax.ShapeDtypeStruct((_OUT_PAD, b_pad), jnp.float32),
        grid=grid,
        in_specs=[x_spec] + param_specs,
        out_specs=o_spec,
        compiler_params=pltpu.CompilerParams(
            dimension_semantics=("parallel",)),  # shards batch tiles across TCs on v7x
    )(x_in, *flat)

    # padded feature rows are provably zero; drop them and the batch padding
    return out_t[:_OUT_DIM, :batch].T


def _natural_layout_supported(params):
    """One-time probe: does the in-kernel (transposed-rhs) relayout lower here?"""
    global _NATURAL_OK
    if _NATURAL_OK is None:
        try:
            probe = jnp.ones((8, _IN_DIM), jnp.float32)
            jax.block_until_ready(_run_pallas(probe, params, natural_input=True))
            _NATURAL_OK = True
        except Exception:
            _NATURAL_OK = False
    return _NATURAL_OK


def actor_net_forward(x, params):
    natural = _natural_layout_supported(params)
    return _run_pallas(x, params, natural_input=natural)


def actor_net_reference(x, params):
    """Pure-JAX reference matching the PyTorch forward."""
    (w1, b1), (w2, b2), (w3, b3), (w4, b4), (w5, b5), (w6, b6) = params
    h = x @ w1.T + b1
    h = jax.nn.leaky_relu(h @ w2.T + b2, _NEG_SLOPE)
    h = jax.nn.leaky_relu(h @ w3.T + b3, _NEG_SLOPE)
    h = jax.nn.leaky_relu(h @ w4.T + b4, _NEG_SLOPE)
    h = jax.nn.leaky_relu(h @ w5.T + b5, _NEG_SLOPE)
    return h @ w6.T + b6


if __name__ == "__main__":
    key = jax.random.PRNGKey(0)
    key, kx = jax.random.split(key)
    params = init_params(key)

    # small shape consistent with the module
    batch = 8
    x = jax.random.normal(kx, (batch, 4), jnp.float32)
    out = jax.block_until_ready(actor_net_forward(x, params))
    ref = actor_net_reference(x, params)
    assert out.shape == (batch, 2), out.shape
    # bf16 matmul operands (f32 accumulation) -> loosened tolerance vs the f32 reference
    assert jnp.allclose(out, ref, atol=5e-2, rtol=5e-2), float(jnp.max(jnp.abs(out - ref)))

    # larger batch exercises the multi-tile "parallel" grid and the in-kernel lane chunking
    key, kx2 = jax.random.split(key)
    batch2 = 2048
    x2 = jax.random.normal(kx2, (batch2, 4), jnp.float32)
    out2 = jax.block_until_ready(actor_net_forward(x2, params))
    ref2 = actor_net_reference(x2, params)
    assert out2.shape == (batch2, 2), out2.shape
    assert jnp.allclose(out2, ref2, atol=5e-2, rtol=5e-2), float(jnp.max(jnp.abs(out2 - ref2)))

    print("KERNEL_OK")
</pallas_src>

<mosaic_0001>
module attributes {stable_mosaic.version = 11 : i64} {
  func.func @kernel(%arg0: i32, %arg1: memref<128x4xf32, #tpu.memory_space<vmem>>, %arg2: memref<40x4xf32, #tpu.memory_space<vmem>>, %arg3: memref<40x1xf32, #tpu.memory_space<vmem>>, %arg4: memref<56x40xbf16, #tpu.memory_space<vmem>>, %arg5: memref<56x1xf32, #tpu.memory_space<vmem>>, %arg6: memref<32x56xbf16, #tpu.memory_space<vmem>>, %arg7: memref<32x1xf32, #tpu.memory_space<vmem>>, %arg8: memref<16x32xbf16, #tpu.memory_space<vmem>>, %arg9: memref<16x1xf32, #tpu.memory_space<vmem>>, %arg10: memref<8x16xbf16, #tpu.memory_space<vmem>>, %arg11: memref<8x1xf32, #tpu.memory_space<vmem>>, %arg12: memref<8x128xf32, #tpu.memory_space<vmem>>) attributes {dimension_semantics = [#tpu.dimension_semantics<parallel>], iteration_bounds = array<i64: 1>, scalar_prefetch = 0 : i64, scratch_operands = 0 : i64, tpu.core_type = #tpu.core_type<tc>, window_params = [{transform_indices = @transform_0, window_bounds = array<i64: 128, 4>}, {pipeline_mode = #tpu.pipeline_mode<synchronous>, transform_indices = @transform_1, window_bounds = array<i64: 40, 4>}, {pipeline_mode = #tpu.pipeline_mode<synchronous>, transform_indices = @transform_2, window_bounds = array<i64: 40, 1>}, {pipeline_mode = #tpu.pipeline_mode<synchronous>, transform_indices = @transform_3, window_bounds = array<i64: 56, 40>}, {pipeline_mode = #tpu.pipeline_mode<synchronous>, transform_indices = @transform_4, window_bounds = array<i64: 56, 1>}, {pipeline_mode = #tpu.pipeline_mode<synchronous>, transform_indices = @transform_5, window_bounds = array<i64: 32, 56>}, {pipeline_mode = #tpu.pipeline_mode<synchronous>, transform_indices = @transform_6, window_bounds = array<i64: 32, 1>}, {pipeline_mode = #tpu.pipeline_mode<synchronous>, transform_indices = @transform_7, window_bounds = array<i64: 16, 32>}, {pipeline_mode = #tpu.pipeline_mode<synchronous>, transform_indices = @transform_8, window_bounds = array<i64: 16, 1>}, {pipeline_mode = #tpu.pipeline_mode<synchronous>, transform_indices = @transform_9, window_bounds = array<i64: 8, 16>}, {pipeline_mode = #tpu.pipeline_mode<synchronous>, transform_indices = @transform_10, window_bounds = array<i64: 8, 1>}, {transform_indices = @transform_11, window_bounds = array<i64: 8, 128>}]} {
    %c0 = arith.constant 0 : index
    %c0_0 = arith.constant 0 : index
    %0 = vector.load %arg1[%c0, %c0_0] : memref<128x4xf32, #tpu.memory_space<vmem>>, vector<128x4xf32>
    %c0_1 = arith.constant 0 : index
    %c0_2 = arith.constant 0 : index
    %1 = vector.load %arg2[%c0_1, %c0_2] : memref<40x4xf32, #tpu.memory_space<vmem>>, vector<40x4xf32>
    %cst = arith.constant dense<0.000000e+00> : vector<40x128xf32>
    %2 = tpu.matmul %1, %0, %cst {dimension_numbers = #tpu.dot_dimension_numbers<[1], [1], [0], [0], [0, 0, 1, 0], [], []>} : vector<40x4xf32>, vector<128x4xf32>, vector<40x128xf32> -> vector<40x128xf32>
    %c0_3 = arith.constant 0 : index
    %c0_4 = arith.constant 0 : index
    %3 = vector.load %arg3[%c0_3, %c0_4] : memref<40x1xf32, #tpu.memory_space<vmem>>, vector<40x1xf32>
    %4 = vector.broadcast %3 : vector<40x1xf32> to vector<40x128xf32>
    %5 = arith.addf %2, %4 : vector<40x128xf32>
    %cst_5 = arith.constant 0.00999999977 : f32
    %6 = vector.broadcast %cst_5 : f32 to vector<40x128xf32>
    %7 = arith.mulf %6, %5 : vector<40x128xf32>
    %8 = arith.maximumf %5, %7 : vector<40x128xf32>
    %c0_6 = arith.constant 0 : index
    %c0_7 = arith.constant 0 : index
    %9 = vector.load %arg4[%c0_6, %c0_7] : memref<56x40xbf16, #tpu.memory_space<vmem>>, vector<56x40xbf16>
    %10 = arith.truncf %8 : vector<40x128xf32> to vector<40x128xbf16>
    %cst_8 = arith.constant dense<0.000000e+00> : vector<56x128xf32>
    %11 = tpu.matmul %9, %10, %cst_8 {dimension_numbers = #tpu.dot_dimension_numbers<[1], [0], [0], [1], [0, 0, 1, 1], [], []>} : vector<56x40xbf16>, vector<40x128xbf16>, vector<56x128xf32> -> vector<56x128xf32>
    %c0_9 = arith.constant 0 : index
    %c0_10 = arith.constant 0 : index
    %12 = vector.load %arg5[%c0_9, %c0_10] : memref<56x1xf32, #tpu.memory_space<vmem>>, vector<56x1xf32>
    %13 = vector.broadcast %12 : vector<56x1xf32> to vector<56x128xf32>
    %14 = arith.addf %11, %13 : vector<56x128xf32>
    %cst_11 = arith.constant 0.00999999977 : f32
    %15 = vector.broadcast %cst_11 : f32 to vector<56x128xf32>
    %16 = arith.mulf %15, %14 : vector<56x128xf32>
    %17 = arith.maximumf %14, %16 : vector<56x128xf32>
    %c0_12 = arith.constant 0 : index
    %c0_13 = arith.constant 0 : index
    %18 = vector.load %arg6[%c0_12, %c0_13] : memref<32x56xbf16, #tpu.memory_space<vmem>>, vector<32x56xbf16>
    %19 = arith.truncf %17 : vector<56x128xf32> to vector<56x128xbf16>
    %cst_14 = arith.constant dense<0.000000e+00> : vector<32x128xf32>
    %20 = tpu.matmul %18, %19, %cst_14 {dimension_numbers = #tpu.dot_dimension_numbers<[1], [0], [0], [1], [0, 0, 1, 1], [], []>} : vector<32x56xbf16>, vector<56x128xbf16>, vector<32x128xf32> -> vector<32x128xf32>
    %c0_15 = arith.constant 0 : index
    %c0_16 = arith.constant 0 : index
    %21 = vector.load %arg7[%c0_15, %c0_16] : memref<32x1xf32, #tpu.memory_space<vmem>>, vector<32x1xf32>
    %22 = vector.broadcast %21 : vector<32x1xf32> to vector<32x128xf32>
    %23 = arith.addf %20, %22 : vector<32x128xf32>
    %cst_17 = arith.constant 0.00999999977 : f32
    %24 = vector.broadcast %cst_17 : f32 to vector<32x128xf32>
    %25 = arith.mulf %24, %23 : vector<32x128xf32>
    %26 = arith.maximumf %23, %25 : vector<32x128xf32>
    %c0_18 = arith.constant 0 : index
    %c0_19 = arith.constant 0 : index
    %27 = vector.load %arg8[%c0_18, %c0_19] : memref<16x32xbf16, #tpu.memory_space<vmem>>, vector<16x32xbf16>
    %28 = arith.truncf %26 : vector<32x128xf32> to vector<32x128xbf16>
    %cst_20 = arith.constant dense<0.000000e+00> : vector<16x128xf32>
    %29 = tpu.matmul %27, %28, %cst_20 {dimension_numbers = #tpu.dot_dimension_numbers<[1], [0], [0], [1], [0, 0, 1, 1], [], []>} : vector<16x32xbf16>, vector<32x128xbf16>, vector<16x128xf32> -> vector<16x128xf32>
    %c0_21 = arith.constant 0 : index
    %c0_22 = arith.constant 0 : index
    %30 = vector.load %arg9[%c0_21, %c0_22] : memref<16x1xf32, #tpu.memory_space<vmem>>, vector<16x1xf32>
    %31 = vector.broadcast %30 : vector<16x1xf32> to vector<16x128xf32>
    %32 = arith.addf %29, %31 : vector<16x128xf32>
    %cst_23 = arith.constant 0.00999999977 : f32
    %33 = vector.broadcast %cst_23 : f32 to vector<16x128xf32>
    %34 = arith.mulf %33, %32 : vector<16x128xf32>
    %35 = arith.maximumf %32, %34 : vector<16x128xf32>
    %c0_24 = arith.constant 0 : index
    %c0_25 = arith.constant 0 : index
    %36 = vector.load %arg10[%c0_24, %c0_25] : memref<8x16xbf16, #tpu.memory_space<vmem>>, vector<8x16xbf16>
    %37 = arith.truncf %35 : vector<16x128xf32> to vector<16x128xbf16>
    %cst_26 = arith.constant dense<0.000000e+00> : vector<8x128xf32>
    %38 = tpu.matmul %36, %37, %cst_26 {dimension_numbers = #tpu.dot_dimension_numbers<[1], [0], [0], [1], [0, 0, 1, 1], [], []>} : vector<8x16xbf16>, vector<16x128xbf16>, vector<8x128xf32> -> vector<8x128xf32>
    %c0_27 = arith.constant 0 : index
    %c0_28 = arith.constant 0 : index
    %39 = vector.load %arg11[%c0_27, %c0_28] : memref<8x1xf32, #tpu.memory_space<vmem>>, vector<8x1xf32>
    %40 = vector.broadcast %39 : vector<8x1xf32> to vector<8x128xf32>
    %41 = arith.addf %38, %40 : vector<8x128xf32>
    %c0_29 = arith.constant 0 : index
    %c0_30 = arith.constant 0 : index
    %42 = vector.load %arg12[%c0_29, %c0_30] : memref<8x128xf32, #tpu.memory_space<vmem>>, vector<8x128xf32>
    tpu.vector_store %arg12[%c0_29, %c0_30], %41 {strides = array<i32>} : memref<8x128xf32, #tpu.memory_space<vmem>>, vector<8x128xf32>,
    return
  }
  func.func @transform_0(%arg0: i32) -> (i32, i32) {
    %c0_i32 = arith.constant 0 : i32
    %c0_i32_0 = arith.constant 0 : i32
    return %arg0, %c0_i32 : i32, i32
  }
  func.func @transform_1(%arg0: i32) -> (i32, i32) {
    %c0_i32 = arith.constant 0 : i32
    %c0_i32_0 = arith.constant 0 : i32
    %c0_i32_1 = arith.constant 0 : i32
    return %c0_i32, %c0_i32_0 : i32, i32
  }
  func.func @transform_2(%arg0: i32) -> (i32, i32) {
    %c0_i32 = arith.constant 0 : i32
    %c0_i32_0 = arith.constant 0 : i32
    %c0_i32_1 = arith.constant 0 : i32
    return %c0_i32, %c0_i32_0 : i32, i32
  }
  func.func @transform_3(%arg0: i32) -> (i32, i32) {
    %c0_i32 = arith.constant 0 : i32
    %c0_i32_0 = arith.constant 0 : i32
    %c0_i32_1 = arith.constant 0 : i32
    return %c0_i32, %c0_i32_0 : i32, i32
  }
  func.func @transform_4(%arg0: i32) -> (i32, i32) {
    %c0_i32 = arith.constant 0 : i32
    %c0_i32_0 = arith.constant 0 : i32
    %c0_i32_1 = arith.constant 0 : i32
    return %c0_i32, %c0_i32_0 : i32, i32
  }
  func.func @transform_5(%arg0: i32) -> (i32, i32) {
    %c0_i32 = arith.constant 0 : i32
    %c0_i32_0 = arith.constant 0 : i32
    %c0_i32_1 = arith.constant 0 : i32
    return %c0_i32, %c0_i32_0 : i32, i32
  }
  func.func @transform_6(%arg0: i32) -> (i32, i32) {
    %c0_i32 = arith.constant 0 : i32
    %c0_i32_0 = arith.constant 0 : i32
    %c0_i32_1 = arith.constant 0 : i32
    return %c0_i32, %c0_i32_0 : i32, i32
  }
  func.func @transform_7(%arg0: i32) -> (i32, i32) {
    %c0_i32 = arith.constant 0 : i32
    %c0_i32_0 = arith.constant 0 : i32
    %c0_i32_1 = arith.constant 0 : i32
    return %c0_i32, %c0_i32_0 : i32, i32
  }
  func.func @transform_8(%arg0: i32) -> (i32, i32) {
    %c0_i32 = arith.constant 0 : i32
    %c0_i32_0 = arith.constant 0 : i32
    %c0_i32_1 = arith.constant 0 : i32
    return %c0_i32, %c0_i32_0 : i32, i32
  }
  func.func @transform_9(%arg0: i32) -> (i32, i32) {
    %c0_i32 = arith.constant 0 : i32
    %c0_i32_0 = arith.constant 0 : i32
    %c0_i32_1 = arith.constant 0 : i32
    return %c0_i32, %c0_i32_0 : i32, i32
  }
  func.func @transform_10(%arg0: i32) -> (i32, i32) {
    %c0_i32 = arith.constant 0 : i32
    %c0_i32_0 = arith.constant 0 : i32
    %c0_i32_1 = arith.constant 0 : i32
    return %c0_i32, %c0_i32_0 : i32, i32
  }
  func.func @transform_11(%arg0: i32) -> (i32, i32) {
    %c0_i32 = arith.constant 0 : i32
    %c0_i32_0 = arith.constant 0 : i32
    return %c0_i32, %arg0 : i32, i32
  }
}

module attributes {stable_mosaic.version = 11 : i64} {
  func.func @kernel(%arg0: i32, %arg1: memref<8x128xf32, #tpu.memory_space<vmem>>, %arg2: memref<40x8xf32, #tpu.memory_space<vmem>>, %arg3: memref<40x1xf32, #tpu.memory_space<vmem>>, %arg4: memref<56x40xbf16, #tpu.memory_space<vmem>>, %arg5: memref<56x1xf32, #tpu.memory_space<vmem>>, %arg6: memref<32x56xbf16, #tpu.memory_space<vmem>>, %arg7: memref<32x1xf32, #tpu.memory_space<vmem>>, %arg8: memref<16x32xbf16, #tpu.memory_space<vmem>>, %arg9: memref<16x1xf32, #tpu.memory_space<vmem>>, %arg10: memref<8x16xbf16, #tpu.memory_space<vmem>>, %arg11: memref<8x1xf32, #tpu.memory_space<vmem>>, %arg12: memref<8x128xf32, #tpu.memory_space<vmem>>) attributes {dimension_semantics = [#tpu.dimension_semantics<parallel>], iteration_bounds = array<i64: 1>, scalar_prefetch = 0 : i64, scratch_operands = 0 : i64, tpu.core_type = #tpu.core_type<tc>, window_params = [{transform_indices = @transform_0, window_bounds = array<i64: 8, 128>}, {pipeline_mode = #tpu.pipeline_mode<synchronous>, transform_indices = @transform_1, window_bounds = array<i64: 40, 8>}, {pipeline_mode = #tpu.pipeline_mode<synchronous>, transform_indices = @transform_2, window_bounds = array<i64: 40, 1>}, {pipeline_mode = #tpu.pipeline_mode<synchronous>, transform_indices = @transform_3, window_bounds = array<i64: 56, 40>}, {pipeline_mode = #tpu.pipeline_mode<synchronous>, transform_indices = @transform_4, window_bounds = array<i64: 56, 1>}, {pipeline_mode = #tpu.pipeline_mode<synchronous>, transform_indices = @transform_5, window_bounds = array<i64: 32, 56>}, {pipeline_mode = #tpu.pipeline_mode<synchronous>, transform_indices = @transform_6, window_bounds = array<i64: 32, 1>}, {pipeline_mode = #tpu.pipeline_mode<synchronous>, transform_indices = @transform_7, window_bounds = array<i64: 16, 32>}, {pipeline_mode = #tpu.pipeline_mode<synchronous>, transform_indices = @transform_8, window_bounds = array<i64: 16, 1>}, {pipeline_mode = #tpu.pipeline_mode<synchronous>, transform_indices = @transform_9, window_bounds = array<i64: 8, 16>}, {pipeline_mode = #tpu.pipeline_mode<synchronous>, transform_indices = @transform_10, window_bounds = array<i64: 8, 1>}, {transform_indices = @transform_11, window_bounds = array<i64: 8, 128>}]} {
    %c0 = arith.constant 0 : index
    %c0_0 = arith.constant 0 : index
    %0 = vector.load %arg1[%c0, %c0_0] : memref<8x128xf32, #tpu.memory_space<vmem>>, vector<8x128xf32>
    %c0_1 = arith.constant 0 : index
    %c0_2 = arith.constant 0 : index
    %1 = vector.load %arg2[%c0_1, %c0_2] : memref<40x8xf32, #tpu.memory_space<vmem>>, vector<40x8xf32>
    %cst = arith.constant dense<0.000000e+00> : vector<40x128xf32>
    %2 = tpu.matmul %1, %0, %cst {dimension_numbers = #tpu.dot_dimension_numbers<[1], [0], [0], [1], [0, 0, 1, 1], [], []>} : vector<40x8xf32>, vector<8x128xf32>, vector<40x128xf32> -> vector<40x128xf32>
    %c0_3 = arith.constant 0 : index
    %c0_4 = arith.constant 0 : index
    %3 = vector.load %arg3[%c0_3, %c0_4] : memref<40x1xf32, #tpu.memory_space<vmem>>, vector<40x1xf32>
    %4 = vector.broadcast %3 : vector<40x1xf32> to vector<40x128xf32>
    %5 = arith.addf %2, %4 : vector<40x128xf32>
    %cst_5 = arith.constant 0.00999999977 : f32
    %6 = vector.broadcast %cst_5 : f32 to vector<40x128xf32>
    %7 = arith.mulf %6, %5 : vector<40x128xf32>
    %8 = arith.maximumf %5, %7 : vector<40x128xf32>
    %c0_6 = arith.constant 0 : index
    %c0_7 = arith.constant 0 : index
    %9 = vector.load %arg4[%c0_6, %c0_7] : memref<56x40xbf16, #tpu.memory_space<vmem>>, vector<56x40xbf16>
    %10 = arith.truncf %8 : vector<40x128xf32> to vector<40x128xbf16>
    %cst_8 = arith.constant dense<0.000000e+00> : vector<56x128xf32>
    %11 = tpu.matmul %9, %10, %cst_8 {dimension_numbers = #tpu.dot_dimension_numbers<[1], [0], [0], [1], [0, 0, 1, 1], [], []>} : vector<56x40xbf16>, vector<40x128xbf16>, vector<56x128xf32> -> vector<56x128xf32>
    %c0_9 = arith.constant 0 : index
    %c0_10 = arith.constant 0 : index
    %12 = vector.load %arg5[%c0_9, %c0_10] : memref<56x1xf32, #tpu.memory_space<vmem>>, vector<56x1xf32>
    %13 = vector.broadcast %12 : vector<56x1xf32> to vector<56x128xf32>
    %14 = arith.addf %11, %13 : vector<56x128xf32>
    %cst_11 = arith.constant 0.00999999977 : f32
    %15 = vector.broadcast %cst_11 : f32 to vector<56x128xf32>
    %16 = arith.mulf %15, %14 : vector<56x128xf32>
    %17 = arith.maximumf %14, %16 : vector<56x128xf32>
    %c0_12 = arith.constant 0 : index
    %c0_13 = arith.constant 0 : index
    %18 = vector.load %arg6[%c0_12, %c0_13] : memref<32x56xbf16, #tpu.memory_space<vmem>>, vector<32x56xbf16>
    %19 = arith.truncf %17 : vector<56x128xf32> to vector<56x128xbf16>
    %cst_14 = arith.constant dense<0.000000e+00> : vector<32x128xf32>
    %20 = tpu.matmul %18, %19, %cst_14 {dimension_numbers = #tpu.dot_dimension_numbers<[1], [0], [0], [1], [0, 0, 1, 1], [], []>} : vector<32x56xbf16>, vector<56x128xbf16>, vector<32x128xf32> -> vector<32x128xf32>
    %c0_15 = arith.constant 0 : index
    %c0_16 = arith.constant 0 : index
    %21 = vector.load %arg7[%c0_15, %c0_16] : memref<32x1xf32, #tpu.memory_space<vmem>>, vector<32x1xf32>
    %22 = vector.broadcast %21 : vector<32x1xf32> to vector<32x128xf32>
    %23 = arith.addf %20, %22 : vector<32x128xf32>
    %cst_17 = arith.constant 0.00999999977 : f32
    %24 = vector.broadcast %cst_17 : f32 to vector<32x128xf32>
    %25 = arith.mulf %24, %23 : vector<32x128xf32>
    %26 = arith.maximumf %23, %25 : vector<32x128xf32>
    %c0_18 = arith.constant 0 : index
    %c0_19 = arith.constant 0 : index
    %27 = vector.load %arg8[%c0_18, %c0_19] : memref<16x32xbf16, #tpu.memory_space<vmem>>, vector<16x32xbf16>
    %28 = arith.truncf %26 : vector<32x128xf32> to vector<32x128xbf16>
    %cst_20 = arith.constant dense<0.000000e+00> : vector<16x128xf32>
    %29 = tpu.matmul %27, %28, %cst_20 {dimension_numbers = #tpu.dot_dimension_numbers<[1], [0], [0], [1], [0, 0, 1, 1], [], []>} : vector<16x32xbf16>, vector<32x128xbf16>, vector<16x128xf32> -> vector<16x128xf32>
    %c0_21 = arith.constant 0 : index
    %c0_22 = arith.constant 0 : index
    %30 = vector.load %arg9[%c0_21, %c0_22] : memref<16x1xf32, #tpu.memory_space<vmem>>, vector<16x1xf32>
    %31 = vector.broadcast %30 : vector<16x1xf32> to vector<16x128xf32>
    %32 = arith.addf %29, %31 : vector<16x128xf32>
    %cst_23 = arith.constant 0.00999999977 : f32
    %33 = vector.broadcast %cst_23 : f32 to vector<16x128xf32>
    %34 = arith.mulf %33, %32 : vector<16x128xf32>
    %35 = arith.maximumf %32, %34 : vector<16x128xf32>
    %c0_24 = arith.constant 0 : index
    %c0_25 = arith.constant 0 : index
    %36 = vector.load %arg10[%c0_24, %c0_25] : memref<8x16xbf16, #tpu.memory_space<vmem>>, vector<8x16xbf16>
    %37 = arith.truncf %35 : vector<16x128xf32> to vector<16x128xbf16>
    %cst_26 = arith.constant dense<0.000000e+00> : vector<8x128xf32>
    %38 = tpu.matmul %36, %37, %cst_26 {dimension_numbers = #tpu.dot_dimension_numbers<[1], [0], [0], [1], [0, 0, 1, 1], [], []>} : vector<8x16xbf16>, vector<16x128xbf16>, vector<8x128xf32> -> vector<8x128xf32>
    %c0_27 = arith.constant 0 : index
    %c0_28 = arith.constant 0 : index
    %39 = vector.load %arg11[%c0_27, %c0_28] : memref<8x1xf32, #tpu.memory_space<vmem>>, vector<8x1xf32>
    %40 = vector.broadcast %39 : vector<8x1xf32> to vector<8x128xf32>
    %41 = arith.addf %38, %40 : vector<8x128xf32>
    %c0_29 = arith.constant 0 : index
    %c0_30 = arith.constant 0 : index
    %42 = vector.load %arg12[%c0_29, %c0_30] : memref<8x128xf32, #tpu.memory_space<vmem>>, vector<8x128xf32>
    tpu.vector_store %arg12[%c0_29, %c0_30], %41 {strides = array<i32>} : memref<8x128xf32, #tpu.memory_space<vmem>>, vector<8x128xf32>,
    return
  }
  func.func @transform_0(%arg0: i32) -> (i32, i32) {
    %c0_i32 = arith.constant 0 : i32
    %c0_i32_0 = arith.constant 0 : i32
    return %c0_i32, %arg0 : i32, i32
  }
  func.func @transform_1(%arg0: i32) -> (i32, i32) {
    %c0_i32 = arith.constant 0 : i32
    %c0_i32_0 = arith.constant 0 : i32
    %c0_i32_1 = arith.constant 0 : i32
    return %c0_i32, %c0_i32_0 : i32, i32
  }
  func.func @transform_2(%arg0: i32) -> (i32, i32) {
    %c0_i32 = arith.constant 0 : i32
    %c0_i32_0 = arith.constant 0 : i32
    %c0_i32_1 = arith.constant 0 : i32
    return %c0_i32, %c0_i32_0 : i32, i32
  }
  func.func @transform_3(%arg0: i32) -> (i32, i32) {
    %c0_i32 = arith.constant 0 : i32
    %c0_i32_0 = arith.constant 0 : i32
    %c0_i32_1 = arith.constant 0 : i32
    return %c0_i32, %c0_i32_0 : i32, i32
  }
  func.func @transform_4(%arg0: i32) -> (i32, i32) {
    %c0_i32 = arith.constant 0 : i32
    %c0_i32_0 = arith.constant 0 : i32
    %c0_i32_1 = arith.constant 0 : i32
    return %c0_i32, %c0_i32_0 : i32, i32
  }
  func.func @transform_5(%arg0: i32) -> (i32, i32) {
    %c0_i32 = arith.constant 0 : i32
    %c0_i32_0 = arith.constant 0 : i32
    %c0_i32_1 = arith.constant 0 : i32
    return %c0_i32, %c0_i32_0 : i32, i32
  }
  func.func @transform_6(%arg0: i32) -> (i32, i32) {
    %c0_i32 = arith.constant 0 : i32
    %c0_i32_0 = arith.constant 0 : i32
    %c0_i32_1 = arith.constant 0 : i32
    return %c0_i32, %c0_i32_0 : i32, i32
  }
  func.func @transform_7(%arg0: i32) -> (i32, i32) {
    %c0_i32 = arith.constant 0 : i32
    %c0_i32_0 = arith.constant 0 : i32
    %c0_i32_1 = arith.constant 0 : i32
    return %c0_i32, %c0_i32_0 : i32, i32
  }
  func.func @transform_8(%arg0: i32) -> (i32, i32) {
    %c0_i32 = arith.constant 0 : i32
    %c0_i32_0 = arith.constant 0 : i32
    %c0_i32_1 = arith.constant 0 : i32
    return %c0_i32, %c0_i32_0 : i32, i32
  }
  func.func @transform_9(%arg0: i32) -> (i32, i32) {
    %c0_i32 = arith.constant 0 : i32
    %c0_i32_0 = arith.constant 0 : i32
    %c0_i32_1 = arith.constant 0 : i32
    return %c0_i32, %c0_i32_0 : i32, i32
  }
  func.func @transform_10(%arg0: i32) -> (i32, i32) {
    %c0_i32 = arith.constant 0 : i32
    %c0_i32_0 = arith.constant 0 : i32
    %c0_i32_1 = arith.constant 0 : i32
    return %c0_i32, %c0_i32_0 : i32, i32
  }
  func.func @transform_11(%arg0: i32) -> (i32, i32) {
    %c0_i32 = arith.constant 0 : i32
    %c0_i32_0 = arith.constant 0 : i32
    return %c0_i32, %arg0 : i32, i32
  }
}

</mosaic_0001>

<bundles_post_ra>
// kernel: tpu_custom_call.1
= control target key start
LH: loop header
LB: loop body
LE: loop exit
PB: predicated region body
PF: predicated region fallthrough
CT: control target
= control target key end

     0   :  { %vm91_vm0 = vcmask 31744   ;;  %v900_v2 = vmov 0.0|0.0   ;;  %vm901_vm2 = vmmov 0   ;;  %v902_v5 = vmov 0.0   ;;  %s1183_s0 = inlined_call_operand.vmem [shape: f32[128,4], index: 0, kind: input, shape index: {}]   ;;  %s1184_s1 = inlined_call_operand.vmem [shape: f32[40,4], index: 1, kind: input, shape index: {}]   ;;  %s1185_s2 = inlined_call_operand.vmem [shape: f32[40,1], index: 2, kind: input, shape index: {}]   ;;  %s1186_s3 = inlined_call_operand.vmem [shape: bf16[56,40], index: 3, kind: input, shape index: {}]   ;;  %s1187_s4 = inlined_call_operand.vmem [shape: f32[56,1], index: 4, kind: input, shape index: {}]   ;;  %s1188_s5 = inlined_call_operand.vmem [shape: bf16[32,56], index: 5, kind: input, shape index: {}]   ;;  %s1189_s6 = inlined_call_operand.vmem [shape: f32[32,1], index: 6, kind: input, shape index: {}]   ;;  %s1190_s7 = inlined_call_operand.vmem [shape: bf16[16,32], index: 7, kind: input, shape index: {}]   ;;  %s1191_s8 = inlined_call_operand.vmem [shape: f32[16,1], index: 8, kind: input, shape index: {}]   ;;  %s1192_s9 = inlined_call_operand.vmem [shape: bf16[8,16], index: 9, kind: input, shape index: {}]   ;;  %s1193_s10 = inlined_call_operand.vmem [shape: f32[8,1], index: 10, kind: input, shape index: {}]   ;;  %s1194_s11 = inlined_call_operand.hbm [shape: f32[8,128], index: 11, kind: output, shape index: {}]  }
   0x1   :  { %v40_v0 = vld [vmem:[%s1183_s0] sm:$0xff]  ;;  %v41_v1 = vld [vmem:[%s1183_s0 + $0x8] sm:$0xff]  ;;  %828 = vmatprep.subr.bf16.mxu0 %v900_v2  ;;  %vm974_vm1 = vmpackc.low %vm91_vm0, %vm91_vm0  ;;  %773 = vmatprep.mubr.msk.f32.mxu0 %vm901_vm2, %v902_v5  ;;  %v903_v6 = vmov 0  }
   0x2   :  { %v829_v3 = vpack.c.bf16 %v41_v1, %v40_v0  ;;  %867 = vset.pattern.permute.xlu0 %v903_v6  ;;  %868 = vset.pattern.permute.xlu1 %v903_v6  ;;  %v42_v7 = vld [vmem:[%s1183_s0 + $0x10] sm:$0xff]  ;;  %v43_v8 = vld [vmem:[%s1183_s0 + $0x18] sm:$0xff]  ;;  %v61_v10 = vld [vmem:[%s1185_s2] sm:$0xff] }
   0x3   :  { %v833_v9 = vpack.c.bf16 %v43_v8, %v42_v7  ;;  %68 = vperm.xlu0 %867, %v61_v10   ;;  %v63_v11 = vld [vmem:[%s1185_s2 + $0x10] sm:$0xff]  ;;  %v62_v12 = vld [vmem:[%s1185_s2 + $0x8] sm:$0xff]  ;;  %v64_v13 = vld [vmem:[%s1185_s2 + $0x18] sm:$0xff] }
   0x4   :  { %831 = vmatpush3.bf16.xpose.msk.msra.mxu0 %vm974_vm1, %v829_v3  ;;  %78 = vperm.xlu1 %868, %v63_v11   ;;  %v44_v14 = vld [vmem:[%s1183_s0 + $0x20] sm:$0xff]  ;;  %v45_v15 = vld [vmem:[%s1183_s0 + $0x28] sm:$0xff]  ;;  %v267_v20 = vld [vmem:[%s1187_s4 + $0x10] sm:$0xff] }
   0x5   :  { %832 = vmatprep.subr.bf16.mxu0 %v900_v2  ;;  %v65_v16 = vld [vmem:[%s1185_s2 + $0x20] sm:$0xff]  ;;  %v837_v18 = vpack.c.bf16 %v45_v15, %v44_v14  ;;  %v266_v19 = vld [vmem:[%s1187_s4 + $0x8] sm:$0xff] }
   0x6   :  { %v265_v17 = vld [vmem:[%s1187_s4] sm:$0xff] }
   0x7   :  { %73 = vperm.xlu0 %867, %v62_v12  }
   0x8   :  { %83 = vperm.xlu1 %868, %v64_v13  }
   0xb   :  { %88 = vperm.xlu0 %867, %v65_v16  }
   0xc   :  { %835 = vmatpush3.bf16.xpose.msk.msra.mxu0 %vm974_vm1, %v833_v9  ;;  %274 = vperm.xlu1 %868, %v265_v17  }
   0xd   :  { %836 = vmatprep.subr.bf16.mxu0 %v900_v2 }
   0xe   :  { %16 = vsyncpa [#allocation3], 0  ;;  %v46_v21 = vld [vmem:[%s1183_s0 + $0x30] sm:$0xff]  ;;  %v47_v22 = vld [vmem:[%s1183_s0 + $0x38] sm:$0xff]  ;;  %vm325_vm3 = vcmask 326656   ;;  %vm338_vm4 = vcmask 1043456  }
   0xf   :  { %279 = vperm.xlu0 %867, %v266_v19   ;;  %v268_v23 = vld [vmem:[%s1187_s4 + $0x18] sm:$0xff]  ;;  %v269_v24 = vld [vmem:[%s1187_s4 + $0x20] sm:$0xff]  ;;  %v841_v25 = vpack.c.bf16 %v47_v22, %v46_v21  ;;  %v270_v26 = vld [vmem:[%s1187_s4 + $0x28] sm:$0xff]  ;;  %vm462_vm5 = vcmask 457728   ;;  %vm550_vm6 = vcmask 261120   ;;  %vm607_vm7 = vcmask 130048  }
  0x10   :  { %284 = vperm.xlu1 %868, %v267_v20   ;;  %v271_v27 = vld [vmem:[%s1187_s4 + $0x30] sm:$0xff]  ;;  %v48_v28 = vld [vmem:[%s1183_s0 + $0x40] sm:$0xff]  ;;  %v49_v29 = vld [vmem:[%s1183_s0 + $0x48] sm:$0xff] }
  0x11   :  { %v428_v30 = vld [vmem:[%s1189_s6] sm:$0xff]  ;;  %v429_v31 = vld [vmem:[%s1189_s6 + $0x8] sm:$0xff]  ;;  %v845_v32 = vpack.c.bf16 %v49_v29, %v48_v28  ;;  %v430_v33 = vld [vmem:[%s1189_s6 + $0x10] sm:$0xff] }
  0x12   :  { %v431_v34 = vld [vmem:[%s1189_s6 + $0x18] sm:$0xff]  ;;  %v50_v35 = vld [vmem:[%s1183_s0 + $0x50] sm:$0xff]  ;;  %v533_v37 = vld [vmem:[%s1191_s8] sm:$0xff] }
  0x13   :  { %289 = vperm.xlu0 %867, %v268_v23   ;;  %v51_v36 = vld [vmem:[%s1183_s0 + $0x58] sm:$0xff]  ;;  %v534_v38 = vld [vmem:[%s1191_s8 + $0x8] sm:$0xff]  ;;  %v601_v40 = vld [vmem:[%s1193_s10] sm:$0xff]  ;;  %s904_s10 = smov [#allocation2]  }
  0x14   :  { %839 = vmatpush3.bf16.xpose.msk.msra.mxu0 %vm974_vm1, %v837_v18  ;;  %294 = vperm.xlu1 %868, %v269_v24   ;;  %v849_v39 = vpack.c.bf16 %v51_v36, %v50_v35  ;;  %v52_v41 = vld [vmem:[%s1183_s0 + $0x60] sm:$0xff]  ;;  %v53_v42 = vld [vmem:[%s1183_s0 + $0x68] sm:$0xff]  ;;  %v54_v44 = vld [vmem:[%s1183_s0 + $0x70] sm:$0xff]  ;;  %s658_s22 = sshll.u32 %s904_s10, 4  ;;  %s659_s22 = int_to_ptr.vmem [resolvable:$true] %s658_s22 }
  0x15   :  { %840 = vmatprep.subr.bf16.mxu0 %v900_v2  ;;  %v853_v43 = vpack.c.bf16 %v53_v42, %v52_v41  ;;  %v55_v45 = vld [vmem:[%s1183_s0 + $0x78] sm:$0xff]  ;;  %v56_v47 = vld [vmem:[%s1184_s1] sm:$0xff]  ;;  %v57_v48 = vld [vmem:[%s1184_s1 + $0x8] sm:$0xff]  ;;  %s876_s23 = scalar_lea.vmem %s659_s22, 128  ;;  %p881_p1 = scmp.lt.s32.totalorder %s659_s22, %s659_s22 }
  0x16   :  { %v857_v46 = vpack.c.bf16 %v55_v45, %v54_v44  ;;  %v58_v49 = vld [vmem:[%s1184_s1 + $0x10] sm:$0xff]  ;;  %v59_v50 = vld [vmem:[%s1184_s1 + $0x18] sm:$0xff]  ;;  %v60_v51 = vld [vmem:[%s1184_s1 + $0x20] sm:$0xff]  ;;  %p877_p0 = scmp.ne.s32.totalorder %s659_s22, %s876_s23  ;;  %p882_p2 = scmp.lt.s32.totalorder %s876_s23, %s876_s23 }
  0x17   :  { %299 = vperm.xlu0 %867, %v270_v26   ;;  %v869_v52 = vld [vmem:[%s1186_s3] sm:$0xff]   ;;  %v870_v24 = vld [vmem:[%s1186_s3 + $0x8] sm:$0xff]   ;;  %v872_v26 = vld [vmem:[%s1186_s3 + $0x18] ss:$0 sps:$4 sm:$0xff]  }
  0x18   :  { %304 = vperm.xlu1 %868, %v271_v27   ;;  %794 = vmatprep.mubr.msk.bf16.mxu1 %vm325_vm3, %v869_v52  ;;  %v873_v27 = vld [vmem:[%s1188_s5] sm:$0xff]   ;;  %p883_p3 = por %p882_p2, %p881_p1 }
  0x1a   :  { %p884_p4 = pnand %p883_p3, %p877_p0 }
  0x1b   :  { %434 = vperm.xlu0 %867, %v428_v30  }
  0x1c   :  { %843 = vmatpush3.bf16.xpose.msk.msra.mxu0 %vm974_vm1, %v841_v25  ;;  %439 = vperm.xlu1 %868, %v429_v31   ;;  %v871_v25 = vld [vmem:[%s1186_s3 + $0x10] sm:$0xff]  }
  0x1d   :  { %844 = vmatprep.subr.bf16.mxu0 %v900_v2 }
  0x1f   :  { %444 = vperm.xlu0 %867, %v430_v33  }
  0x20   :  { %449 = vperm.xlu1 %868, %v431_v34  }
  0x23   :  { %537 = vperm.xlu0 %867, %v533_v37  }
  0x24   :  { %847 = vmatpush3.bf16.xpose.msk.msra.mxu0 %vm974_vm1, %v845_v32  ;;  %542 = vperm.xlu1 %868, %v534_v38  }
  0x25   :  { %848 = vmatprep.subr.bf16.mxu0 %v900_v2 }
  0x27   :  { %604 = vperm.xlu0 %867, %v601_v40  }
  0x2c   :  { %851 = vmatpush3.bf16.xpose.msk.msra.mxu0 %vm974_vm1, %v849_v39 }
  0x2d   :  { %852 = vmatprep.subr.bf16.mxu0 %v900_v2 }
  0x34   :  { %855 = vmatpush3.bf16.xpose.msk.msra.mxu0 %vm974_vm1, %v853_v43 }
  0x35   :  { %856 = vmatprep.subr.bf16.mxu0 %v900_v2 }
  0x3c   :  { %859 = vmatpush3.bf16.xpose.msk.msra.mxu0 %vm974_vm1, %v857_v46 }
  0x43   :  { %774 = vmatmul.mubr.msk.f32.vlgmr.msra.gmra.mrb[0].mxu0 %vm91_vm0, %v56_v47 }
  0x44   :  { %776 = vmatprep.mubr.msk.f32.mxu0 %vm901_vm2, %v902_v5 }
  0x47   :  { %777 = vmatmul.mubr.msk.f32.gmra.mrb[2].mxu0 %vm91_vm0, %v57_v48 }
  0x48   :  { %779 = vmatprep.mubr.msk.f32.mxu0 %vm901_vm2, %v902_v5 }
  0x4b   :  { %780 = vmatmul.mubr.msk.f32.gmra.mrb[4].mxu0 %vm91_vm0, %v58_v49 }
  0x4c   :  { %782 = vmatprep.mubr.msk.f32.mxu0 %vm901_vm2, %v902_v5 }
  0x4f   :  { %783 = vmatmul.mubr.msk.f32.gmra.mrb[6].mxu0 %vm91_vm0, %v59_v50 }
  0x50   :  { %785 = vmatprep.mubr.msk.f32.mxu0 %vm901_vm2, %v902_v5 }
  0x53   :  { %786 = vmatmul.mubr.msk.f32.gmra.mrb[8].mxu0 %vm91_vm0, %v60_v51 }
  0x82   :  { %v69_v53 = vpop.permute.xlu0 %68 }
  0x83   :  { %v79_v62 = vpop.permute.xlu1 %78 }
  0x86   :  { %v74_v57 = vpop.permute.xlu0 %73 }
  0x87   :  { %v84_v7 = vpop.permute.xlu1 %83 }
  0x8a   :  { %v89_v13 = vpop.permute.xlu0 %88 }
  0x8b   :  { %v275_v28 = vpop.permute.xlu1 %274 }
  0x8e   :  { %v280_v29 = vpop.permute.xlu0 %279 }
  0x8f   :  { %v285_v30 = vpop.permute.xlu1 %284 }
  0x92   :  { %v290_v32 = vpop.permute.xlu0 %289 }
  0x93   :  { %v295_v35 = vpop.permute.xlu1 %294 }
  0x97   :  { %v305_v47 = vpop.permute.xlu1 %304 }
 0x116   :  { %v221_v54 = vpop.f32.mrb[0].mxu0 }
 0x117   :  { %v222_v55 = vadd.f32 %v221_v54, %v69_v53  ;;  %v775_v56 = vpop.f32.mrb[1].mxu0 }
 0x119   :  { %v245_v59 = vmul.f32 0.01, %v222_v55 }
 0x11a   :  { %v226_v58 = vpop.f32.mrb[2].mxu0 }
 0x11b   :  { %v227_v60 = vadd.f32 %v226_v58, %v74_v57  ;;  %v778_v61 = vpop.f32.mrb[3].mxu0  ;;  %v250_v1 = vmax.f32 %v222_v55, %v245_v59  ;;  %v300_v57 = vpop.permute.xlu0 %299 }
 0x11d   :  { %v246_v63 = vmul.f32 0.01, %v227_v60 }
 0x11e   :  { %v231_v0 = vpop.f32.mrb[4].mxu0 }
 0x11f   :  { %v251_v2 = vmax.f32 %v227_v60, %v246_v63  ;;  %v232_v3 = vadd.f32 %v231_v0, %v79_v62  ;;  %v781_v4 = vpop.f32.mrb[5].mxu0 }
 0x121   :  { %v262_v6 = vpack.c.bf16 %v251_v2, %v250_v1  ;;  %v247_v9 = vmul.f32 0.01, %v232_v3 }
 0x122   :  { %v236_v8 = vpop.f32.mrb[6].mxu0 }
 0x123   :  { %v237_v10 = vadd.f32 %v236_v8, %v84_v7  ;;  %v784_v11 = vpop.f32.mrb[7].mxu0  ;;  %788 = vmatprep.subr.bf16.mxu1 %v262_v6  ;;  %v252_v15 = vmax.f32 %v232_v3, %v247_v9  ;;  %v435_v7 = vpop.permute.xlu0 %434 }
 0x124   :  { %789 = vmatpush3.bf16.msra.mxu1 %v262_v6  ;;  %v874_v6 = vld [vmem:[%s1188_s5 + $0x8] sm:$0xff]   ;;  %v440_v8 = vpop.permute.xlu1 %439 }
 0x125   :  { %v248_v12 = vmul.f32 0.01, %v237_v10 }
 0x126   :  { %v241_v14 = vpop.f32.mrb[8].mxu0 }
 0x127   :  { %v253_v16 = vmax.f32 %v237_v10, %v248_v12  ;;  %v242_v17 = vadd.f32 %v241_v14, %v89_v13  ;;  %v787_v18 = vpop.f32.mrb[9].mxu0  ;;  %v445_v9 = vpop.permute.xlu0 %444 }
 0x128   :  { %v450_v13 = vpop.permute.xlu1 %449 }
 0x129   :  { %v249_v19 = vmul.f32 0.01, %v242_v17  ;;  %v263_v20 = vpack.c.bf16 %v253_v16, %v252_v15 }
 0x12b   :  { %v254_v21 = vmax.f32 %v242_v17, %v249_v19  ;;  %790 = vmatprep.subr.bf16.mxu1 %v263_v20 }
 0x12c   :  { %791 = vmatpush3.bf16.msra.mxu1 %v263_v20 }
 0x12d   :  { %v264_v22 = vpack.c.bf16 %v254_v21, %v254_v21 }
 0x12f   :  { %860 = vmatprep.subr.msk.bf16.mxu1 %vm338_vm4, %v264_v22  ;;  %v340_v23 = vsel %vm338_vm4, %v264_v22, 0 }
 0x130   :  { %793 = vmatpush3.bf16.msra.mxu1 %v340_v23 }
 0x133   :  { %795 = vmatmul.mubr.msk.bf16.vlgmr.msra.gmra.mrb[0].mxu1 %vm325_vm3, %v870_v24 }
 0x134   :  { %798 = vmatprep.mubr.msk.bf16.mxu1 %vm325_vm3, %v871_v25 }
 0x13b   :  { %799 = vmatmul.mubr.msk.bf16.gmra.mrb[4].mxu1 %vm325_vm3, %v872_v26 }
 0x13c   :  { %810 = vmatprep.mubr.msk.bf16.mxu1 %vm462_vm5, %v873_v27 }
 0x206   :  { %v796_v31 = vpop.f32.mrb[0].mxu1 }
 0x207   :  { %v385_v33 = vadd.f32 %v796_v31, %v285_v30  ;;  %v376_v34 = vpop.f32.mrb[1].mxu1  ;;  %v538_v30 = vpop.permute.xlu0 %537 }
 0x208   :  { %v377_v36 = vadd.f32 %v376_v34, %v275_v28  ;;  %v797_v37 = vpop.f32.mrb[2].mxu1  ;;  %v543_v34 = vpop.permute.xlu1 %542 }
 0x209   :  { %v408_v38 = vmul.f32 0.01, %v385_v33  ;;  %v388_v39 = vadd.f32 %v797_v37, %v290_v32  ;;  %v379_v40 = vpop.f32.mrb[3].mxu1 }
 0x20a   :  { %v406_v41 = vmul.f32 0.01, %v377_v36  ;;  %v380_v42 = vadd.f32 %v379_v40, %v280_v29  ;;  %v875_v29 = vld [vmem:[%s1190_s7] sm:$0xff]  }
 0x20b   :  { %v409_v43 = vmul.f32 0.01, %v388_v39  ;;  %v415_v45 = vmax.f32 %v385_v33, %v408_v38 }
 0x20c   :  { %v407_v44 = vmul.f32 0.01, %v380_v42  ;;  %v413_v48 = vmax.f32 %v377_v36, %v406_v41 }
 0x20d   :  { %v416_v46 = vmax.f32 %v388_v39, %v409_v43  ;;  %v599_v43 = vld [vmem:[%s1192_s9] sm:$0xf] }
 0x20e   :  { %v414_v49 = vmax.f32 %v380_v42, %v407_v44  ;;  %v800_v50 = vpop.f32.mrb[4].mxu1 }
 0x20f   :  { %v401_v51 = vadd.f32 %v800_v50, %v305_v47  ;;  %v392_v52 = vpop.f32.mrb[5].mxu1  ;;  %v425_v53 = vpack.c.bf16 %v416_v46, %v415_v45 }
 0x210   :  { %v393_v54 = vadd.f32 %v392_v52, %v295_v35  ;;  %v801_v55 = vpop.f32.mrb[6].mxu1  ;;  %v424_v56 = vpack.c.bf16 %v414_v49, %v413_v48 }
 0x211   :  { %v395_v58 = vpop.f32.mrb[7].mxu1  ;;  %v412_v59 = vmul.f32 0.01, %v401_v51 }
 0x212   :  { %v410_v60 = vmul.f32 0.01, %v393_v54  ;;  %v396_v61 = vadd.f32 %v395_v58, %v300_v57  ;;  %802 = vmatprep.subr.bf16.mxu1 %v424_v56 }
 0x213   :  { %803 = vmatpush3.bf16.msra.mxu1 %v424_v56  ;;  %v419_v63 = vmax.f32 %v401_v51, %v412_v59 }
 0x214   :  { %v411_v62 = vmul.f32 0.01, %v396_v61  ;;  %804 = vmatprep.subr.bf16.mxu1 %v425_v53  ;;  %v417_v0 = vmax.f32 %v393_v54, %v410_v60 }
 0x215   :  { %v427_v3 = vpack.c.bf16 %v419_v63, %v419_v63 }
 0x216   :  { %v418_v1 = vmax.f32 %v396_v61, %v411_v62 }
 0x217   :  { %805 = vmatpush3.bf16.msra.mxu1 %v425_v53  ;;  %v470_v4 = vsel %vm338_vm4, %v427_v3, 0 }
 0x218   :  { %v426_v2 = vpack.c.bf16 %v418_v1, %v417_v0 }
 0x21a   :  { %806 = vmatprep.subr.bf16.mxu1 %v426_v2 }
 0x21b   :  { %807 = vmatpush3.bf16.msra.mxu1 %v426_v2 }
 0x21c   :  { %861 = vmatprep.subr.msk.bf16.mxu1 %vm338_vm4, %v427_v3 }
 0x21f   :  { %809 = vmatpush3.bf16.msra.mxu1 %v470_v4 }
 0x220   :  { %814 = vmatprep.subr.bf16.mxu1 %v902_v5 }
 0x222   :  { %811 = vmatmul.mubr.msk.bf16.vlgmr.msra.gmra.mrb[8].mxu1 %vm462_vm5, %v874_v6 }
 0x223   :  { %818 = vmatprep.mubr.msk.bf16.mxu1 %vm901_vm2, %v902_v5 }
 0x2f5   :  { %v812_v10 = vpop.f32.mrb[8].mxu1 }
 0x2f6   :  { %v515_v11 = vadd.f32 %v812_v10, %v445_v9  ;;  %v506_v12 = vpop.f32.mrb[9].mxu1 }
 0x2f7   :  { %v507_v14 = vadd.f32 %v506_v12, %v435_v7  ;;  %v813_v15 = vpop.f32.mrb[10].mxu1 }
 0x2f8   :  { %v523_v16 = vmul.f32 0.01, %v515_v11  ;;  %v518_v17 = vadd.f32 %v813_v15, %v450_v13  ;;  %v509_v18 = vpop.f32.mrb[11].mxu1 }
 0x2f9   :  { %v521_v19 = vmul.f32 0.01, %v507_v14  ;;  %v510_v20 = vadd.f32 %v509_v18, %v440_v8 }
 0x2fa   :  { %v524_v21 = vmul.f32 0.01, %v518_v17  ;;  %v527_v23 = vmax.f32 %v515_v11, %v523_v16 }
 0x2fb   :  { %v522_v22 = vmul.f32 0.01, %v510_v20  ;;  %v525_v25 = vmax.f32 %v507_v14, %v521_v19 }
 0x2fc   :  { %v528_v24 = vmax.f32 %v518_v17, %v524_v21 }
 0x2fd   :  { %v526_v26 = vmax.f32 %v510_v20, %v522_v22 }
 0x2fe   :  { %v532_v27 = vpack.c.bf16 %v528_v24, %v527_v23 }
 0x2ff   :  { %v531_v28 = vpack.c.bf16 %v526_v26, %v525_v25 }
 0x301   :  { %815 = vmatpush3.bf16.msra.mxu1 %v531_v28 }
 0x302   :  { %816 = vmatprep.subr.bf16.mxu1 %v902_v5 }
 0x305   :  { %817 = vmatpush3.bf16.msra.mxu1 %v532_v27 }
 0x306   :  { %822 = vmatprep.subr.bf16.mxu1 %v902_v5 }
 0x308   :  { %819 = vmatmul.mubr.msk.bf16.vlgmr.msra.gmra.mrb[12].mxu1 %vm550_vm6, %v875_v29 }
 0x309   :  { %824 = vmatprep.mubr.msk.bf16.mxu1 %vm901_vm2, %v902_v5  ;;  %v605_v5 = vpop.permute.xlu0 %604 }
 0x3db   :  { %v588_v31 = vpop.f32.mrb[12].mxu1 }
 0x3dc   :  { %v589_v32 = vadd.f32 %v588_v31, %v538_v30  ;;  %v820_v33 = vpop.f32.mrb[13].mxu1 }
 0x3dd   :  { %v591_v35 = vpop.f32.mrb[14].mxu1 }
 0x3de   :  { %v595_v36 = vmul.f32 0.01, %v589_v32  ;;  %v592_v37 = vadd.f32 %v591_v35, %v543_v34  ;;  %v821_v38 = vpop.f32.mrb[15].mxu1 }
 0x3e0   :  { %v596_v39 = vmul.f32 0.01, %v592_v37  ;;  %v597_v40 = vmax.f32 %v589_v32, %v595_v36 }
 0x3e2   :  { %v598_v41 = vmax.f32 %v592_v37, %v596_v39 }
 0x3e4   :  { %v600_v42 = vpack.c.bf16 %v598_v41, %v597_v40 }
 0x3e6   :  { %823 = vmatpush3.bf16.msra.mxu1 %v600_v42 }
 0x3e9   :  { %825 = vmatmul.mubr.msk.bf16.vlgmr.msra.gmra.mrb[16].mxu1 %vm607_vm7, %v599_v43 }
 0x4bc   :  { %v645_v44 = vpop.f32.mrb[16].mxu1 }
 0x4bd   :  { %v646_v45 = vadd.f32 %v645_v44, %v605_v5  ;;  %v826_v46 = vpop.f32.mrb[17].mxu1 }
 0x4be   :  { %v648_v47 = vpop.f32.mrb[18].mxu1 }
 0x4bf   :  { %651 = vst [vmem:[#allocation2] sm:$0xff] %v646_v45  ;;  %v827_v48 = vpop.f32.mrb[19].mxu1 }
 0x4c0   :  { %887 = shalt.err (!%p884_p4)
}
 0x4c1   :  { %s888_s24 = scalar_lea.hbm %s1194_s11, 128 }
 0x4c2   :  { %p889_p5 = scmp.ne.s32.totalorder %s1194_s11, %s888_s24  ;;  %p892_p6 = scmp.lt.u32.totalorder %s888_s24, %s1194_s11 }
 0x4c4   :  { %p894_p7 = pnand %p892_p6, %p889_p5 }
 0x4c6   :  { %897 = shalt.err (!%p894_p7)
}
 0x4c7   :  { %661 = dma.vmem_to_hbm [thread:$0]  %s659_s22, 128, %s1194_s11, [#allocation3]  }
 0x4c8   :  { %898 = dma.done.wait [#allocation3], 128  }
 0x4c9   :  { %899 = vsyncadd [#allocation3], 4294967168 }
 0x4ca   :  { %665 = vsyncpa [#allocation3], 1 }

// kernel: tpu_custom_call.1
= control target key start
LH: loop header
LB: loop body
LE: loop exit
PB: predicated region body
PF: predicated region fallthrough
CT: control target
= control target key end

     0   :  { %vm76_vm0 = vcmask 64512   ;;  %v743_v2 = vmov 0.0   ;;  %vm744_vm1 = vmmov 0   ;;  %v745_v3 = vmov 0   ;;  %s951_s0 = inlined_call_operand.vmem [shape: f32[8,128], index: 0, kind: input, shape index: {}]   ;;  %s952_s1 = inlined_call_operand.vmem [shape: f32[40,8], index: 1, kind: input, shape index: {}]   ;;  %s953_s2 = inlined_call_operand.vmem [shape: f32[40,1], index: 2, kind: input, shape index: {}]   ;;  %s954_s3 = inlined_call_operand.vmem [shape: bf16[56,40], index: 3, kind: input, shape index: {}]   ;;  %s955_s4 = inlined_call_operand.vmem [shape: f32[56,1], index: 4, kind: input, shape index: {}]   ;;  %s956_s5 = inlined_call_operand.vmem [shape: bf16[32,56], index: 5, kind: input, shape index: {}]   ;;  %s957_s6 = inlined_call_operand.vmem [shape: f32[32,1], index: 6, kind: input, shape index: {}]   ;;  %s958_s7 = inlined_call_operand.vmem [shape: bf16[16,32], index: 7, kind: input, shape index: {}]   ;;  %s959_s8 = inlined_call_operand.vmem [shape: f32[16,1], index: 8, kind: input, shape index: {}]   ;;  %s960_s9 = inlined_call_operand.vmem [shape: bf16[8,16], index: 9, kind: input, shape index: {}]   ;;  %s961_s10 = inlined_call_operand.vmem [shape: f32[8,1], index: 10, kind: input, shape index: {}]   ;;  %s962_s11 = inlined_call_operand.hbm [shape: f32[8,128], index: 11, kind: output, shape index: {}]  }
   0x1   :  { %v40_v0 = vld [vmem:[%s951_s0] sm:$0xff]  ;;  %647 = vmatprep.subr.mxu0 %v743_v2  ;;  %649 = vmatprep.mubr.msk.f32.mxu0 %vm744_vm1, %v743_v2  ;;  %v48_v5 = vld [vmem:[%s953_s2 + $0x10] sm:$0xff]  ;;  %v42_v6 = vld [vmem:[%s952_s1 + $0x8] sm:$0xff] }
   0x2   :  { %v41_v1 = vld [vmem:[%s952_s1] sm:$0xff]  ;;  %648 = vmatpush3.msra.mxu0 %v40_v0  ;;  %710 = vset.pattern.permute.xlu0 %v745_v3  ;;  %v47_v7 = vld [vmem:[%s953_s2 + $0x8] sm:$0xff]  ;;  %v49_v8 = vld [vmem:[%s953_s2 + $0x18] sm:$0xff] }
   0x3   :  { %v46_v4 = vld [vmem:[%s953_s2] sm:$0xff]  ;;  %650 = vmatmul.mubr.msk.f32.vlgmr.msra.gmra.mrb[0].mxu0 %vm76_vm0, %v41_v1  ;;  %711 = vset.pattern.permute.xlu1 %v745_v3  ;;  %v43_v9 = vld [vmem:[%s952_s1 + $0x10] sm:$0xff]  ;;  %v44_v12 = vld [vmem:[%s952_s1 + $0x18] sm:$0xff] }
   0x4   :  { %53 = vperm.xlu0 %710, %v46_v4   ;;  %652 = vmatprep.mubr.msk.f32.mxu0 %vm744_vm1, %v743_v2  ;;  %v50_v10 = vld [vmem:[%s953_s2 + $0x20] sm:$0xff]  ;;  %v203_v13 = vld [vmem:[%s955_s4 + $0x8] sm:$0xff] }
   0x5   :  { %63 = vperm.xlu1 %711, %v48_v5   ;;  %v202_v11 = vld [vmem:[%s955_s4] sm:$0xff] }
   0x7   :  { %653 = vmatmul.mubr.msk.f32.gmra.mrb[2].mxu0 %vm76_vm0, %v42_v6 }
   0x8   :  { %58 = vperm.xlu0 %710, %v47_v7   ;;  %655 = vmatprep.mubr.msk.f32.mxu0 %vm744_vm1, %v743_v2 }
   0x9   :  { %68 = vperm.xlu1 %711, %v49_v8  }
   0xb   :  { %656 = vmatmul.mubr.msk.f32.gmra.mrb[4].mxu0 %vm76_vm0, %v43_v9 }
   0xc   :  { %73 = vperm.xlu0 %710, %v50_v10   ;;  %658 = vmatprep.mubr.msk.f32.mxu0 %vm744_vm1, %v743_v2 }
   0xd   :  { %16 = vsyncpa [#allocation3], 0  ;;  %211 = vperm.xlu1 %711, %v202_v11   ;;  %v204_v14 = vld [vmem:[%s955_s4 + $0x10] sm:$0xff]  ;;  %v45_v15 = vld [vmem:[%s952_s1 + $0x20] sm:$0xff]  ;;  %vm262_vm2 = vcmask 326656   ;;  %vm275_vm3 = vcmask 1043456  }
   0xe   :  { %v205_v16 = vld [vmem:[%s955_s4 + $0x18] sm:$0xff]  ;;  %v206_v17 = vld [vmem:[%s955_s4 + $0x20] sm:$0xff]  ;;  %v207_v18 = vld [vmem:[%s955_s4 + $0x28] sm:$0xff]  ;;  %vm399_vm4 = vcmask 457728   ;;  %vm487_vm5 = vcmask 261120   ;;  %vm544_vm6 = vcmask 130048  }
   0xf   :  { %659 = vmatmul.mubr.msk.f32.gmra.mrb[6].mxu0 %vm76_vm0, %v44_v12  ;;  %v208_v19 = vld [vmem:[%s955_s4 + $0x30] sm:$0xff]  ;;  %v365_v20 = vld [vmem:[%s957_s6] sm:$0xff]  ;;  %v366_v21 = vld [vmem:[%s957_s6 + $0x8] sm:$0xff] }
  0x10   :  { %216 = vperm.xlu0 %710, %v203_v13   ;;  %661 = vmatprep.mubr.msk.f32.mxu0 %vm744_vm1, %v743_v2  ;;  %v367_v22 = vld [vmem:[%s957_s6 + $0x10] sm:$0xff]  ;;  %v368_v23 = vld [vmem:[%s957_s6 + $0x18] sm:$0xff]  ;;  %v470_v24 = vld [vmem:[%s959_s8] sm:$0xff] }
  0x11   :  { %221 = vperm.xlu1 %711, %v204_v14   ;;  %v471_v25 = vld [vmem:[%s959_s8 + $0x8] sm:$0xff]  ;;  %v538_v26 = vld [vmem:[%s961_s10] sm:$0xff]  ;;  %v714_v63 = vld [vmem:[%s954_s3 + $0x10] sm:$0xff]  }
  0x12   :  { %v712_v27 = vld [vmem:[%s954_s3] sm:$0xff]   ;;  %v713_v62 = vld [vmem:[%s954_s3 + $0x8] sm:$0xff]   ;;  %v715_v0 = vld [vmem:[%s954_s3 + $0x18] ss:$0 sps:$4 sm:$0xff]  }
  0x13   :  { %662 = vmatmul.mubr.msk.f32.gmra.mrb[8].mxu0 %vm76_vm0, %v45_v15  ;;  %670 = vmatprep.mubr.msk.bf16.mxu1 %vm262_vm2, %v712_v27  ;;  %v716_v1 = vld [vmem:[%s956_s5] sm:$0xff]  }
  0x14   :  { %226 = vperm.xlu0 %710, %v205_v16   ;;  %686 = vmatprep.mubr.msk.bf16.mxu0 %vm399_vm4, %v716_v1 }
  0x15   :  { %231 = vperm.xlu1 %711, %v206_v17  }
  0x18   :  { %236 = vperm.xlu0 %710, %v207_v18  }
  0x19   :  { %241 = vperm.xlu1 %711, %v208_v19  }
  0x1c   :  { %371 = vperm.xlu0 %710, %v365_v20  }
  0x1d   :  { %376 = vperm.xlu1 %711, %v366_v21  }
  0x20   :  { %381 = vperm.xlu0 %710, %v367_v22  }
  0x21   :  { %386 = vperm.xlu1 %711, %v368_v23  }
  0x24   :  { %474 = vperm.xlu0 %710, %v470_v24  }
  0x25   :  { %479 = vperm.xlu1 %711, %v471_v25  }
  0x28   :  { %541 = vperm.xlu0 %710, %v538_v26  }
  0x83   :  { %v54_v28 = vpop.permute.xlu0 %53 }
  0x84   :  { %v64_v37 = vpop.permute.xlu1 %63 }
  0x87   :  { %v59_v32 = vpop.permute.xlu0 %58 }
  0x88   :  { %v69_v45 = vpop.permute.xlu1 %68 }
  0x8b   :  { %v74_v51 = vpop.permute.xlu0 %73 }
  0x8c   :  { %v212_v3 = vpop.permute.xlu1 %211 }
  0x8f   :  { %v217_v4 = vpop.permute.xlu0 %216 }
  0x90   :  { %v222_v5 = vpop.permute.xlu1 %221 }
  0x93   :  { %v227_v7 = vpop.permute.xlu0 %226 }
  0x94   :  { %v232_v10 = vpop.permute.xlu1 %231 }
  0x98   :  { %v242_v22 = vpop.permute.xlu1 %241 }
  0xd6   :  { %v158_v29 = vpop.f32.mrb[0].mxu0 }
  0xd7   :  { %v159_v30 = vadd.f32 %v158_v29, %v54_v28  ;;  %v651_v31 = vpop.f32.mrb[1].mxu0 }
  0xd9   :  { %v182_v34 = vmul.f32 0.01, %v159_v30 }
  0xda   :  { %v163_v33 = vpop.f32.mrb[2].mxu0 }
  0xdb   :  { %v164_v35 = vadd.f32 %v163_v33, %v59_v32  ;;  %v654_v36 = vpop.f32.mrb[3].mxu0  ;;  %v187_v40 = vmax.f32 %v159_v30, %v182_v34  ;;  %v237_v32 = vpop.permute.xlu0 %236 }
  0xdd   :  { %v183_v38 = vmul.f32 0.01, %v164_v35 }
  0xde   :  { %v168_v39 = vpop.f32.mrb[4].mxu0 }
  0xdf   :  { %v188_v41 = vmax.f32 %v164_v35, %v183_v38  ;;  %v169_v42 = vadd.f32 %v168_v39, %v64_v37  ;;  %v657_v43 = vpop.f32.mrb[5].mxu0 }
  0xe1   :  { %v199_v44 = vpack.c.bf16 %v188_v41, %v187_v40  ;;  %v184_v47 = vmul.f32 0.01, %v169_v42 }
  0xe2   :  { %v173_v46 = vpop.f32.mrb[6].mxu0 }
  0xe3   :  { %v174_v48 = vadd.f32 %v173_v46, %v69_v45  ;;  %v660_v49 = vpop.f32.mrb[7].mxu0  ;;  %664 = vmatprep.subr.bf16.mxu1 %v199_v44  ;;  %v189_v53 = vmax.f32 %v169_v42, %v184_v47  ;;  %v372_v45 = vpop.permute.xlu0 %371 }
  0xe4   :  { %665 = vmatpush3.bf16.msra.mxu1 %v199_v44  ;;  %v717_v44 = vld [vmem:[%s956_s5 + $0x8] sm:$0xff]   ;;  %v377_v46 = vpop.permute.xlu1 %376 }
  0xe5   :  { %v185_v50 = vmul.f32 0.01, %v174_v48 }
  0xe6   :  { %v178_v52 = vpop.f32.mrb[8].mxu0 }
  0xe7   :  { %v190_v54 = vmax.f32 %v174_v48, %v185_v50  ;;  %v179_v55 = vadd.f32 %v178_v52, %v74_v51  ;;  %v663_v56 = vpop.f32.mrb[9].mxu0  ;;  %v382_v47 = vpop.permute.xlu0 %381 }
  0xe8   :  { %v387_v51 = vpop.permute.xlu1 %386 }
  0xe9   :  { %v186_v57 = vmul.f32 0.01, %v179_v55  ;;  %v200_v58 = vpack.c.bf16 %v190_v54, %v189_v53 }
  0xeb   :  { %v191_v59 = vmax.f32 %v179_v55, %v186_v57  ;;  %666 = vmatprep.subr.bf16.mxu1 %v200_v58 }
  0xec   :  { %667 = vmatpush3.bf16.msra.mxu1 %v200_v58 }
  0xed   :  { %v201_v60 = vpack.c.bf16 %v191_v59, %v191_v59 }
  0xef   :  { %704 = vmatprep.subr.msk.bf16.mxu1 %vm275_vm3, %v201_v60  ;;  %v277_v61 = vsel %vm275_vm3, %v201_v60, 0 }
  0xf0   :  { %669 = vmatpush3.bf16.msra.mxu1 %v277_v61 }
  0xf1   :  { %690 = vmatprep.subr.bf16.mxu1 %v743_v2 }
  0xf3   :  { %671 = vmatmul.mubr.msk.bf16.vlgmr.msra.gmra.mrb[0].mxu1 %vm262_vm2, %v713_v62 }
  0xf4   :  { %674 = vmatprep.mubr.msk.bf16.mxu1 %vm262_vm2, %v714_v63 }
  0xfb   :  { %675 = vmatmul.mubr.msk.bf16.gmra.mrb[4].mxu1 %vm262_vm2, %v715_v0 }
  0xfc   :  { %694 = vmatprep.mubr.msk.bf16.mxu1 %vm744_vm1, %v743_v2 }
 0x1c6   :  { %v672_v6 = vpop.f32.mrb[0].mxu1 }
 0x1c7   :  { %v322_v8 = vadd.f32 %v672_v6, %v222_v5  ;;  %v313_v9 = vpop.f32.mrb[1].mxu1  ;;  %v475_v5 = vpop.permute.xlu0 %474 }
 0x1c8   :  { %v314_v11 = vadd.f32 %v313_v9, %v212_v3  ;;  %v673_v12 = vpop.f32.mrb[2].mxu1  ;;  %v480_v9 = vpop.permute.xlu1 %479 }
 0x1c9   :  { %v345_v13 = vmul.f32 0.01, %v322_v8  ;;  %v325_v14 = vadd.f32 %v673_v12, %v227_v7  ;;  %v316_v15 = vpop.f32.mrb[3].mxu1 }
 0x1ca   :  { %v343_v16 = vmul.f32 0.01, %v314_v11  ;;  %v317_v17 = vadd.f32 %v316_v15, %v217_v4  ;;  %v718_v4 = vld [vmem:[%s958_s7] sm:$0xff]   ;;  %s746_s7 = smov [#allocation2]  }
 0x1cb   :  { %v346_v18 = vmul.f32 0.01, %v325_v14  ;;  %v352_v20 = vmax.f32 %v322_v8, %v345_v13  ;;  %s595_s13 = sshll.u32 %s746_s7, 4  ;;  %s596_s13 = int_to_ptr.vmem [resolvable:$true] %s595_s13 }
 0x1cc   :  { %v344_v19 = vmul.f32 0.01, %v317_v17  ;;  %v350_v23 = vmax.f32 %v314_v11, %v343_v16  ;;  %s719_s14 = scalar_lea.vmem %s596_s13, 128  ;;  %p724_p1 = scmp.lt.s32.totalorder %s596_s13, %s596_s13 }
 0x1cd   :  { %v353_v21 = vmax.f32 %v325_v14, %v346_v18  ;;  %v542_v18 = vpop.permute.xlu0 %541  ;;  %p720_p0 = scmp.ne.s32.totalorder %s596_s13, %s719_s14  ;;  %p725_p2 = scmp.lt.s32.totalorder %s719_s14, %s719_s14 }
 0x1ce   :  { %v351_v24 = vmax.f32 %v317_v17, %v344_v19  ;;  %v676_v25 = vpop.f32.mrb[4].mxu1  ;;  %v536_v17 = vld [vmem:[%s960_s9] sm:$0xf] }
 0x1cf   :  { %v338_v26 = vadd.f32 %v676_v25, %v242_v22  ;;  %v329_v27 = vpop.f32.mrb[5].mxu1  ;;  %v362_v28 = vpack.c.bf16 %v353_v21, %v352_v20  ;;  %p726_p3 = por %p725_p2, %p724_p1 }
 0x1d0   :  { %v330_v29 = vadd.f32 %v329_v27, %v232_v10  ;;  %v677_v30 = vpop.f32.mrb[6].mxu1  ;;  %v361_v31 = vpack.c.bf16 %v351_v24, %v350_v23 }
 0x1d1   :  { %v332_v33 = vpop.f32.mrb[7].mxu1  ;;  %v349_v34 = vmul.f32 0.01, %v338_v26  ;;  %p727_p4 = pnand %p726_p3, %p720_p0 }
 0x1d2   :  { %v347_v35 = vmul.f32 0.01, %v330_v29  ;;  %v333_v36 = vadd.f32 %v332_v33, %v237_v32  ;;  %678 = vmatprep.subr.bf16.mxu0 %v361_v31 }
 0x1d3   :  { %679 = vmatpush3.bf16.msra.mxu0 %v361_v31  ;;  %v356_v38 = vmax.f32 %v338_v26, %v349_v34 }
 0x1d4   :  { %v348_v37 = vmul.f32 0.01, %v333_v36  ;;  %680 = vmatprep.subr.bf16.mxu0 %v362_v28  ;;  %v354_v39 = vmax.f32 %v330_v29, %v347_v35 }
 0x1d5   :  { %v364_v42 = vpack.c.bf16 %v356_v38, %v356_v38 }
 0x1d6   :  { %v355_v40 = vmax.f32 %v333_v36, %v348_v37 }
 0x1d7   :  { %681 = vmatpush3.bf16.msra.mxu0 %v362_v28  ;;  %v407_v43 = vsel %vm275_vm3, %v364_v42, 0 }
 0x1d8   :  { %v363_v41 = vpack.c.bf16 %v355_v40, %v354_v39 }
 0x1da   :  { %682 = vmatprep.subr.bf16.mxu0 %v363_v41 }
 0x1db   :  { %683 = vmatpush3.bf16.msra.mxu0 %v363_v41 }
 0x1dc   :  { %705 = vmatprep.subr.msk.bf16.mxu0 %vm275_vm3, %v364_v42 }
 0x1df   :  { %685 = vmatpush3.bf16.msra.mxu0 %v407_v43 }
 0x1e0   :  { %698 = vmatprep.subr.bf16.mxu0 %v743_v2 }
 0x1e2   :  { %687 = vmatmul.mubr.msk.bf16.vlgmr.msra.gmra.mrb[12].mxu0 %vm399_vm4, %v717_v44 }
 0x1e3   :  { %700 = vmatprep.mubr.msk.bf16.mxu0 %vm744_vm1, %v743_v2 }
 0x2b5   :  { %v688_v48 = vpop.f32.mrb[12].mxu0 }
 0x2b6   :  { %v452_v49 = vadd.f32 %v688_v48, %v382_v47  ;;  %v443_v50 = vpop.f32.mrb[13].mxu0 }
 0x2b7   :  { %v444_v52 = vadd.f32 %v443_v50, %v372_v45  ;;  %v689_v53 = vpop.f32.mrb[14].mxu0 }
 0x2b8   :  { %v460_v54 = vmul.f32 0.01, %v452_v49  ;;  %v455_v55 = vadd.f32 %v689_v53, %v387_v51  ;;  %v446_v56 = vpop.f32.mrb[15].mxu0 }
 0x2b9   :  { %v458_v57 = vmul.f32 0.01, %v444_v52  ;;  %v447_v58 = vadd.f32 %v446_v56, %v377_v46 }
 0x2ba   :  { %v461_v59 = vmul.f32 0.01, %v455_v55  ;;  %v464_v61 = vmax.f32 %v452_v49, %v460_v54 }
 0x2bb   :  { %v459_v60 = vmul.f32 0.01, %v447_v58  ;;  %v462_v63 = vmax.f32 %v444_v52, %v458_v57 }
 0x2bc   :  { %v465_v62 = vmax.f32 %v455_v55, %v461_v59 }
 0x2bd   :  { %v463_v0 = vmax.f32 %v447_v58, %v459_v60 }
 0x2be   :  { %v469_v1 = vpack.c.bf16 %v465_v62, %v464_v61 }
 0x2bf   :  { %v468_v3 = vpack.c.bf16 %v463_v0, %v462_v63 }
 0x2c1   :  { %691 = vmatpush3.bf16.msra.mxu1 %v468_v3 }
 0x2c2   :  { %692 = vmatprep.subr.bf16.mxu1 %v743_v2 }
 0x2c5   :  { %693 = vmatpush3.bf16.msra.mxu1 %v469_v1 }
 0x2c8   :  { %695 = vmatmul.mubr.msk.bf16.vlgmr.msra.gmra.mrb[8].mxu1 %vm487_vm5, %v718_v4 }
 0x39b   :  { %v525_v6 = vpop.f32.mrb[8].mxu1 }
 0x39c   :  { %v526_v7 = vadd.f32 %v525_v6, %v475_v5  ;;  %v696_v8 = vpop.f32.mrb[9].mxu1 }
 0x39d   :  { %v528_v10 = vpop.f32.mrb[10].mxu1 }
 0x39e   :  { %v532_v11 = vmul.f32 0.01, %v526_v7  ;;  %v529_v12 = vadd.f32 %v528_v10, %v480_v9  ;;  %v697_v13 = vpop.f32.mrb[11].mxu1 }
 0x3a0   :  { %v533_v14 = vmul.f32 0.01, %v529_v12  ;;  %v534_v15 = vmax.f32 %v526_v7, %v532_v11 }
 0x3a2   :  { %v535_v16 = vmax.f32 %v529_v12, %v533_v14 }
 0x3a4   :  { %v537_v2 = vpack.c.bf16 %v535_v16, %v534_v15 }
 0x3a6   :  { %699 = vmatpush3.bf16.msra.mxu0 %v537_v2 }
 0x3a9   :  { %701 = vmatmul.mubr.msk.bf16.vlgmr.msra.gmra.mrb[16].mxu0 %vm544_vm6, %v536_v17 }
 0x47c   :  { %v582_v19 = vpop.f32.mrb[16].mxu0 }
 0x47d   :  { %v583_v20 = vadd.f32 %v582_v19, %v542_v18  ;;  %v702_v21 = vpop.f32.mrb[17].mxu0 }
 0x47e   :  { %v585_v22 = vpop.f32.mrb[18].mxu0 }
 0x47f   :  { %588 = vst [vmem:[#allocation2] sm:$0xff] %v583_v20  ;;  %v703_v23 = vpop.f32.mrb[19].mxu0 }
 0x480   :  { %730 = shalt.err (!%p727_p4)
}
 0x481   :  { %s731_s16 = scalar_lea.hbm %s962_s11, 128 }
 0x482   :  { %p732_p5 = scmp.ne.s32.totalorder %s962_s11, %s731_s16  ;;  %p735_p6 = scmp.lt.u32.totalorder %s731_s16, %s962_s11 }
 0x484   :  { %p737_p7 = pnand %p735_p6, %p732_p5 }
 0x486   :  { %740 = shalt.err (!%p737_p7)
}
 0x487   :  { %598 = dma.vmem_to_hbm [thread:$0]  %s596_s13, 128, %s962_s11, [#allocation3]  }
 0x488   :  { %741 = dma.done.wait [#allocation3], 128  }
 0x489   :  { %742 = vsyncadd [#allocation3], 4294967168 }
 0x48a   :  { %602 = vsyncpa [#allocation3], 1 }

</bundles_post_ra>
